<compile_context>
chip_gen: v7x
topology: tpu7x:2x2x1
jax: 0.10.0
libtpu: 0.0.40
codegen_flags: <defaults>
</compile_context>

<pallas_src>
import functools

import jax
import jax.numpy as jnp
from jax.experimental import pallas as pl
from jax.experimental.pallas import tpu as pltpu


def sublayer_connection_kernel(*refs, eps, keep_threshold, keep_scale):
    if keep_threshold is None:
        x_ref, a2_ref, b2_ref, w_ref, bw_ref, o_ref = refs
        bits_ref = None
    else:
        x_ref, a2_ref, b2_ref, w_ref, bw_ref, bits_ref, o_ref = refs

    x = x_ref[...].astype(jnp.float32)                       # (TM, D)
    d = x.shape[-1]

    # ---- LayerNorm (torch semantics: mean / unbiased std / eps added to std) ----
    mean = jnp.mean(x, axis=-1, keepdims=True)
    xc = x - mean
    var_unbiased = jnp.sum(xc * xc, axis=-1, keepdims=True) * (1.0 / (d - 1))
    # One divide per row on a (TM, 1) tensor, broadcast-multiplied over lanes
    # (much cheaper on the VALU than dividing the full (TM, D) tensor).
    inv_std = 1.0 / (jnp.sqrt(var_unbiased) + eps)
    normed = a2_ref[...] * (xc * inv_std) + b2_ref[...]      # (TM, D) f32

    # ---- sublayer := Linear(D, D): bf16 operands on the MXU, f32 accumulation ----
    sub = jnp.dot(normed.astype(jnp.bfloat16), w_ref[...],
                  preferred_element_type=jnp.float32)
    sub = sub + bw_ref[...]

    # ---- dropout (inverted; integer threshold directly on raw uint32 bits) ----
    if keep_threshold is not None:
        keep = bits_ref[...] >= jnp.uint32(keep_threshold)
        sub = sub * jnp.where(keep, jnp.float32(keep_scale), jnp.float32(0.0))

    # ---- residual connection ----
    o_ref[...] = (x + sub).astype(o_ref.dtype)


def _choose_row_tile(m, target=256):
    """Largest row tile <= target that divides m (multiple of 8 when tiled)."""
    if m <= target:
        return m                      # full-extent block is always legal
    for tm in range(target, 7, -8):   # 256, 248, ..., 8 (all multiples of 8)
        if m % tm == 0:
            return tm
    return m                          # fallback: single big tile


def sublayer_connection(x, a2, b2, w_bf16, bw, *, eps=1e-6, dropout_rate=0.0,
                        training=False, rng_key=None, row_tile=256):
    """x: [B, S, D] f32. Returns x + dropout(linear(layernorm(x)))."""
    B, S, D = x.shape
    M = B * S
    tm = _choose_row_tile(M, row_tile)

    x2 = x.reshape(M, D)
    a2r = a2.reshape(1, D).astype(jnp.float32)
    b2r = b2.reshape(1, D).astype(jnp.float32)
    bwr = bw.reshape(1, D).astype(jnp.float32)

    use_dropout = bool(training) and dropout_rate > 0.0
    keep_threshold = None
    keep_scale = 1.0

    inputs = [x2, a2r, b2r, w_bf16, bwr]
    in_specs = [
        pl.BlockSpec((tm, D), lambda i: (i, 0)),     # x rows
        pl.BlockSpec((1, D), lambda i: (0, 0)),      # a_2
        pl.BlockSpec((1, D), lambda i: (0, 0)),      # b_2
        # Full (D, D) bf16 weight resident in VMEM.  For very large D (v7x has
        # only 64 MiB VMEM) add a second grid axis tiling W's output columns
        # and/or single-buffer it with pipeline_mode=pl.Buffered(1).
        pl.BlockSpec((D, D), lambda i: (0, 0)),      # W (sublayer, bf16)
        pl.BlockSpec((1, D), lambda i: (0, 0)),      # b (sublayer bias)
    ]
    if use_dropout:
        if rng_key is None:
            rng_key = jax.random.PRNGKey(0)
        bits = jax.random.bits(rng_key, (M, D), dtype=jnp.uint32)
        keep_threshold = min(int(round(dropout_rate * (2 ** 32))), 2 ** 32 - 1)
        keep_scale = 1.0 / (1.0 - dropout_rate)
        inputs.append(bits)
        in_specs.append(pl.BlockSpec((tm, D), lambda i: (i, 0)))

    kernel = functools.partial(sublayer_connection_kernel, eps=eps,
                               keep_threshold=keep_threshold,
                               keep_scale=keep_scale)

    out2 = pl.pallas_call(
        kernel,
        out_shape=jax.ShapeDtypeStruct((M, D), x.dtype),
        grid=(M // tm,),
        in_specs=in_specs,
        out_specs=pl.BlockSpec((tm, D), lambda i: (i, 0)),
        compiler_params=pltpu.CompilerParams(
            dimension_semantics=("parallel",),       # row tiles are independent
            vmem_limit_bytes=64 * 1024 * 1024),
    )(*inputs)

    return out2.reshape(B, S, D)


if __name__ == "__main__":
    key = jax.random.PRNGKey(0)
    B, S, D = 2, 8, 128
    kx, kw, kb, kd = jax.random.split(key, 4)

    x = jax.random.normal(kx, (B, S, D), dtype=jnp.float32)

    # LayerNorm params (torch init: ones / zeros)
    a2 = jnp.ones((D,), dtype=jnp.float32)
    b2 = jnp.zeros((D,), dtype=jnp.float32)

    # Deterministic synthetic sublayer = Linear(D, D); weight stored in bf16
    # (MXU operand dtype), bias in f32.
    w = jax.random.normal(kw, (D, D), dtype=jnp.float32) * (1.0 / jnp.sqrt(D))
    w_bf16 = w.astype(jnp.bfloat16)
    bw = jax.random.normal(kb, (D,), dtype=jnp.float32) * 0.01

    eps = 1e-6
    p = 0.1

    # Pure-JAX reference pieces (same bf16-operand matmul the kernel performs).
    mean = x.mean(-1, keepdims=True)
    xc = x - mean
    std = jnp.sqrt(jnp.sum(xc * xc, axis=-1, keepdims=True) / (D - 1))
    normed = a2 * xc / (std + eps) + b2
    sub_ref = jnp.dot(normed.astype(jnp.bfloat16), w_bf16,
                      preferred_element_type=jnp.float32) + bw

    # ---- eval mode (dropout = identity) ----
    out = sublayer_connection(x, a2, b2, w_bf16, bw, eps=eps,
                              dropout_rate=p, training=False)
    out = jax.block_until_ready(out)
    assert out.shape == (B, S, D)
    assert jnp.allclose(out, x + sub_ref, atol=3e-3, rtol=3e-3), \
        "eval-mode mismatch vs reference"

    # ---- training mode (host-generated bits, in-kernel threshold + scale) ----
    out_tr = sublayer_connection(x, a2, b2, w_bf16, bw, eps=eps,
                                 dropout_rate=p, training=True, rng_key=kd)
    out_tr = jax.block_until_ready(out_tr)
    bits = jax.random.bits(kd, (B * S, D), dtype=jnp.uint32).reshape(B, S, D)
    thr = min(int(round(p * (2 ** 32))), 2 ** 32 - 1)
    keep = bits >= jnp.uint32(thr)
    expected_tr = x + sub_ref * jnp.where(keep, jnp.float32(1.0 / (1.0 - p)),
                                          jnp.float32(0.0))
    assert out_tr.shape == (B, S, D)
    assert jnp.allclose(out_tr, expected_tr, atol=3e-3, rtol=3e-3), \
        "training-mode mismatch vs reference"

    print("KERNEL_OK")
</pallas_src>

<mosaic_0001>
module attributes {stable_mosaic.version = 11 : i64} {
  func.func @sublayer_connection_kernel(%arg0: i32, %arg1: memref<16x128xf32, #tpu.memory_space<vmem>>, %arg2: memref<1x128xf32, #tpu.memory_space<vmem>>, %arg3: memref<1x128xf32, #tpu.memory_space<vmem>>, %arg4: memref<128x128xbf16, #tpu.memory_space<vmem>>, %arg5: memref<1x128xf32, #tpu.memory_space<vmem>>, %arg6: memref<16x128xf32, #tpu.memory_space<vmem>>) attributes {dimension_semantics = [#tpu.dimension_semantics<parallel>], iteration_bounds = array<i64: 1>, scalar_prefetch = 0 : i64, scratch_operands = 0 : i64, tpu.core_type = #tpu.core_type<tc>, window_params = [{transform_indices = @transform_0, window_bounds = array<i64: 16, 128>}, {pipeline_mode = #tpu.pipeline_mode<synchronous>, transform_indices = @transform_1, window_bounds = array<i64: 1, 128>}, {pipeline_mode = #tpu.pipeline_mode<synchronous>, transform_indices = @transform_2, window_bounds = array<i64: 1, 128>}, {pipeline_mode = #tpu.pipeline_mode<synchronous>, transform_indices = @transform_3, window_bounds = array<i64: 128, 128>}, {pipeline_mode = #tpu.pipeline_mode<synchronous>, transform_indices = @transform_4, window_bounds = array<i64: 1, 128>}, {transform_indices = @transform_5, window_bounds = array<i64: 16, 128>}]} {
    %c0 = arith.constant 0 : index
    %c0_0 = arith.constant 0 : index
    %0 = vector.load %arg1[%c0, %c0_0] : memref<16x128xf32, #tpu.memory_space<vmem>>, vector<16x128xf32>
    %cst = arith.constant dense<0.000000e+00> : vector<16xf32>
    %1 = vector.multi_reduction <add>, %0, %cst [1] : vector<16x128xf32> to vector<16xf32>
    %2 = vector.shape_cast %1 : vector<16xf32> to vector<16x1xf32>
    %cst_1 = arith.constant 1.280000e+02 : f32
    %3 = vector.broadcast %cst_1 : f32 to vector<16x1xf32>
    %4 = arith.divf %2, %3 : vector<16x1xf32>
    %5 = vector.broadcast %4 : vector<16x1xf32> to vector<16x128xf32>
    %6 = arith.subf %0, %5 : vector<16x128xf32>
    %7 = arith.mulf %6, %6 : vector<16x128xf32>
    %cst_2 = arith.constant dense<0.000000e+00> : vector<16xf32>
    %8 = vector.multi_reduction <add>, %7, %cst_2 [1] : vector<16x128xf32> to vector<16xf32>
    %9 = vector.shape_cast %8 : vector<16xf32> to vector<16x1xf32>
    %cst_3 = arith.constant 0.00787401571 : f32
    %10 = vector.broadcast %cst_3 : f32 to vector<16x1xf32>
    %11 = arith.mulf %9, %10 : vector<16x1xf32>
    %12 = math.sqrt %11 : vector<16x1xf32>
    %cst_4 = arith.constant 9.99999997E-7 : f32
    %13 = vector.broadcast %cst_4 : f32 to vector<16x1xf32>
    %14 = arith.addf %12, %13 : vector<16x1xf32>
    %cst_5 = arith.constant 1.000000e+00 : f32
    %15 = vector.broadcast %cst_5 : f32 to vector<16x1xf32>
    %16 = arith.divf %15, %14 : vector<16x1xf32>
    %c0_6 = arith.constant 0 : index
    %c0_7 = arith.constant 0 : index
    %17 = vector.load %arg2[%c0_6, %c0_7] : memref<1x128xf32, #tpu.memory_space<vmem>>, vector<1x128xf32>
    %18 = vector.broadcast %16 : vector<16x1xf32> to vector<16x128xf32>
    %19 = arith.mulf %6, %18 : vector<16x128xf32>
    %20 = vector.broadcast %17 : vector<1x128xf32> to vector<16x128xf32>
    %21 = arith.mulf %20, %19 : vector<16x128xf32>
    %c0_8 = arith.constant 0 : index
    %c0_9 = arith.constant 0 : index
    %22 = vector.load %arg3[%c0_8, %c0_9] : memref<1x128xf32, #tpu.memory_space<vmem>>, vector<1x128xf32>
    %23 = vector.broadcast %22 : vector<1x128xf32> to vector<16x128xf32>
    %24 = arith.addf %21, %23 : vector<16x128xf32>
    %25 = arith.truncf %24 : vector<16x128xf32> to vector<16x128xbf16>
    %c0_10 = arith.constant 0 : index
    %c0_11 = arith.constant 0 : index
    %26 = vector.load %arg4[%c0_10, %c0_11] : memref<128x128xbf16, #tpu.memory_space<vmem>>, vector<128x128xbf16>
    %cst_12 = arith.constant dense<0.000000e+00> : vector<16x128xf32>
    %27 = tpu.matmul %25, %26, %cst_12 {dimension_numbers = #tpu.dot_dimension_numbers<[1], [0], [0], [1], [0, 0, 1, 1], [], []>} : vector<16x128xbf16>, vector<128x128xbf16>, vector<16x128xf32> -> vector<16x128xf32>
    %c0_13 = arith.constant 0 : index
    %c0_14 = arith.constant 0 : index
    %28 = vector.load %arg5[%c0_13, %c0_14] : memref<1x128xf32, #tpu.memory_space<vmem>>, vector<1x128xf32>
    %29 = vector.broadcast %28 : vector<1x128xf32> to vector<16x128xf32>
    %30 = arith.addf %27, %29 : vector<16x128xf32>
    %31 = arith.addf %0, %30 : vector<16x128xf32>
    %c0_15 = arith.constant 0 : index
    %c0_16 = arith.constant 0 : index
    %32 = vector.load %arg6[%c0_15, %c0_16] : memref<16x128xf32, #tpu.memory_space<vmem>>, vector<16x128xf32>
    tpu.vector_store %arg6[%c0_15, %c0_16], %31 {strides = array<i32>} : memref<16x128xf32, #tpu.memory_space<vmem>>, vector<16x128xf32>,
    return
  }
  func.func @transform_0(%arg0: i32) -> (i32, i32) {
    %c0_i32 = arith.constant 0 : i32
    %c0_i32_0 = arith.constant 0 : i32
    return %arg0, %c0_i32 : i32, i32
  }
  func.func @transform_1(%arg0: i32) -> (i32, i32) {
    %c0_i32 = arith.constant 0 : i32
    %c0_i32_0 = arith.constant 0 : i32
    %c0_i32_1 = arith.constant 0 : i32
    return %c0_i32, %c0_i32_0 : i32, i32
  }
  func.func @transform_2(%arg0: i32) -> (i32, i32) {
    %c0_i32 = arith.constant 0 : i32
    %c0_i32_0 = arith.constant 0 : i32
    %c0_i32_1 = arith.constant 0 : i32
    return %c0_i32, %c0_i32_0 : i32, i32
  }
  func.func @transform_3(%arg0: i32) -> (i32, i32) {
    %c0_i32 = arith.constant 0 : i32
    %c0_i32_0 = arith.constant 0 : i32
    %c0_i32_1 = arith.constant 0 : i32
    return %c0_i32, %c0_i32_0 : i32, i32
  }
  func.func @transform_4(%arg0: i32) -> (i32, i32) {
    %c0_i32 = arith.constant 0 : i32
    %c0_i32_0 = arith.constant 0 : i32
    %c0_i32_1 = arith.constant 0 : i32
    return %c0_i32, %c0_i32_0 : i32, i32
  }
  func.func @transform_5(%arg0: i32) -> (i32, i32) {
    %c0_i32 = arith.constant 0 : i32
    %c0_i32_0 = arith.constant 0 : i32
    return %arg0, %c0_i32 : i32, i32
  }
}

</mosaic_0001>

<bundles_post_ra>
// kernel: tpu_custom_call.1
= control target key start
LH: loop header
LB: loop body
LE: loop exit
PB: predicated region body
PF: predicated region fallthrough
CT: control target
= control target key end

     0   :  { %10 = vsyncpa [#allocation3], 0  ;;  %s624_s0 = inlined_call_operand.hbm [shape: f32[16,128], index: 0, kind: input, shape index: {}]   ;;  %s625_s1 = inlined_call_operand.hbm [shape: f32[1,128], index: 1, kind: input, shape index: {}]   ;;  %s626_s2 = inlined_call_operand.hbm [shape: f32[1,128], index: 2, kind: input, shape index: {}]   ;;  %s627_s3 = inlined_call_operand.hbm [shape: bf16[128,128], index: 3, kind: input, shape index: {}]   ;;  %s628_s4 = inlined_call_operand.hbm [shape: f32[1,128], index: 4, kind: input, shape index: {}]   ;;  %s629_s5 = inlined_call_operand.hbm [shape: f32[16,128], index: 5, kind: output, shape index: {}]  }
   0x1   :  { %11 = vsyncpa [#allocation6], 0 }
   0x2   :  { %12 = vsyncpa [#allocation9], 0 }
   0x3   :  { %13 = vsyncpa [#allocation4], 0  ;;  %s487_s18 = smov [#allocation5]   ;;  %s488_s20 = smov [#allocation8]  }
   0x4   :  { %s32_s19 = sshll.u32 %s487_s18, 4  ;;  %s51_s21 = sshll.u32 %s488_s20, 4  ;;  %s33_s19 = int_to_ptr.vmem [resolvable:$true] %s32_s19  ;;  %s529_s21 = int_to_ptr.vmem [resolvable:$true] %s51_s21 }
   0x5   :  { %s347_s24 = scalar_lea.hbm %s625_s1, 16 }
   0x6   :  { %p348_p0 = scmp.ne.s32.totalorder %s625_s1, %s347_s24  ;;  %p351_p1 = scmp.lt.u32.totalorder %s347_s24, %s625_s1 }
   0x8   :  { %p353_p2 = pnand %p351_p1, %p348_p0 }
   0xa   :  { %356 = shalt.err (!%p353_p2)
}
   0xb   :  { %s357_s29 = scalar_lea.vmem %s33_s19, 16  ;;  %s361_s30 = scalar_lea.vmem %s33_s19, 32 }
   0xc   :  { %p358_p3 = scmp.ne.s32.totalorder %s33_s19, %s357_s29  ;;  %p362_p4 = scmp.lt.s32.totalorder %s33_s19, %s33_s19 }
   0xd   :  { %p363_p5 = scmp.lt.s32.totalorder %s361_s30, %s357_s29 }
   0xf   :  { %p364_p6 = por %p363_p5, %p362_p4 }
  0x11   :  { %p365_p7 = pnand %p364_p6, %p358_p3 }
  0x13   :  { %368 = shalt.err (!%p365_p7)
}
  0x14   :  { %35 = dma.hbm_to_vmem [thread:$0]  %s625_s1, 16, %s33_s19, [#allocation6]  }
  0x15   :  { %s369_s10 = scalar_lea.hbm %s627_s3, 1024 }
  0x16   :  { %p370_p8 = scmp.ne.s32.totalorder %s627_s3, %s369_s10  ;;  %p373_p9 = scmp.lt.u32.totalorder %s369_s10, %s627_s3 }
  0x18   :  { %p375_p10 = pnand %p373_p9, %p370_p8 }
  0x1a   :  { %378 = shalt.err (!%p375_p10)
}
  0x1b   :  { %s379_s15 = scalar_lea.vmem %s529_s21, 1024  ;;  %p384_p12 = scmp.lt.s32.totalorder %s529_s21, %s529_s21 }
  0x1c   :  { %p380_p11 = scmp.ne.s32.totalorder %s529_s21, %s379_s15  ;;  %p385_p13 = scmp.lt.s32.totalorder %s379_s15, %s379_s15 }
  0x1e   :  { %p386_p0 = por %p385_p13, %p384_p12 }
  0x20   :  { %p387_p1 = pnand %p386_p0, %p380_p11 }
  0x22   :  { %390 = shalt.err (!%p387_p1)
}
  0x23   :  { %s489_s1 = smov 64   ;;  %s490_s16 = smov 4  }
  0x24   :  { %57 = dma.hbm_to_vmem [thread:$0]  %s627_s3, 1024, %s529_s21, [#allocation9], %s489_s1, %s489_s1, %s490_s16  }
  0x25   :  { %s491_s19 = smov [#allocation2]   ;;  %s391_s24 = scalar_lea.hbm %s624_s0, 256 }
  0x26   :  { %s19_s20 = sshll.u32 %s491_s19, 4  ;;  %p392_p2 = scmp.ne.s32.totalorder %s624_s0, %s391_s24  ;;  %s20_s20 = int_to_ptr.vmem [resolvable:$true] %s19_s20 }
  0x27   :  { %p395_p3 = scmp.lt.u32.totalorder %s391_s24, %s624_s0 }
  0x29   :  { %p397_p4 = pnand %p395_p3, %p392_p2 }
  0x2b   :  { %400 = shalt.err (!%p397_p4)
}
  0x2c   :  { %s401_s29 = scalar_lea.vmem %s20_s20, 256  ;;  %p406_p6 = scmp.lt.s32.totalorder %s20_s20, %s20_s20 }
  0x2d   :  { %p402_p5 = scmp.ne.s32.totalorder %s20_s20, %s401_s29  ;;  %p407_p7 = scmp.lt.s32.totalorder %s401_s29, %s401_s29 }
  0x2f   :  { %p408_p8 = por %p407_p7, %p406_p6 }
  0x31   :  { %p409_p9 = pnand %p408_p8, %p402_p5 }
  0x33   :  { %412 = shalt.err (!%p409_p9)
}
  0x34   :  { %s492_s3 = smov 128   ;;  %s493_s21 = smov 8  }
  0x35   :  { %25 = dma.hbm_to_vmem [thread:$0]  %s624_s0, 256, %s20_s20, [#allocation3], %s492_s3, %s492_s3, %s493_s21  }
  0x36   :  { %s494_s7 = smov [#allocation7]   ;;  %s495_s9 = smov [#allocation10]  }
  0x37   :  { %s42_s8 = sshll.u32 %s494_s7, 4  ;;  %s64_s10 = sshll.u32 %s495_s9, 4  ;;  %s43_s8 = int_to_ptr.vmem [resolvable:$true] %s42_s8  ;;  %s65_s10 = int_to_ptr.vmem [resolvable:$true] %s64_s10 }
  0x38   :  { %s413_s13 = scalar_lea.hbm %s626_s2, 16 }
  0x39   :  { %p414_p10 = scmp.ne.s32.totalorder %s626_s2, %s413_s13  ;;  %p417_p11 = scmp.lt.u32.totalorder %s413_s13, %s626_s2 }
  0x3b   :  { %p419_p12 = pnand %p417_p11, %p414_p10 }
  0x3d   :  { %422 = shalt.err (!%p419_p12)
}
  0x3e   :  { %s423_s0 = scalar_lea.vmem %s43_s8, 16  ;;  %s427_s17 = scalar_lea.vmem %s43_s8, 32 }
  0x3f   :  { %p424_p13 = scmp.ne.s32.totalorder %s43_s8, %s423_s0  ;;  %p428_p0 = scmp.lt.s32.totalorder %s43_s8, %s43_s8 }
  0x40   :  { %p429_p1 = scmp.lt.s32.totalorder %s427_s17, %s423_s0 }
  0x42   :  { %p430_p2 = por %p429_p1, %p428_p0 }
  0x44   :  { %p431_p3 = pnand %p430_p2, %p424_p13 }
  0x46   :  { %434 = shalt.err (!%p431_p3)
}
  0x47   :  { %45 = dma.hbm_to_vmem [thread:$0]  %s626_s2, 16, %s43_s8, [#allocation6]  }
  0x48   :  { %s435_s23 = scalar_lea.hbm %s628_s4, 16 }
  0x49   :  { %p436_p4 = scmp.ne.s32.totalorder %s628_s4, %s435_s23  ;;  %p439_p5 = scmp.lt.u32.totalorder %s435_s23, %s628_s4 }
  0x4b   :  { %p441_p6 = pnand %p439_p5, %p436_p4 }
  0x4d   :  { %444 = shalt.err (!%p441_p6)
}
  0x4e   :  { %s445_s28 = scalar_lea.vmem %s65_s10, 16  ;;  %s449_s29 = scalar_lea.vmem %s65_s10, 32 }
  0x4f   :  { %p446_p7 = scmp.ne.s32.totalorder %s65_s10, %s445_s28  ;;  %p450_p8 = scmp.lt.s32.totalorder %s65_s10, %s65_s10 }
  0x50   :  { %p451_p9 = scmp.lt.s32.totalorder %s449_s29, %s445_s28 }
  0x52   :  { %p452_p10 = por %p451_p9, %p450_p8 }
  0x54   :  { %p453_p11 = pnand %p452_p10, %p446_p7 }
  0x56   :  { %456 = shalt.err (!%p453_p11)
}
  0x57   :  { %67 = dma.hbm_to_vmem [thread:$0]  %s628_s4, 16, %s65_s10, [#allocation9]  }
  0x58   :  { %479 = dma.done.wait [#allocation3], 256  }
  0x59   :  { %480 = vsyncadd [#allocation3], 4294967040 }
  0x5a   :  { %481 = dma.done.wait [#allocation6], 32  }
  0x5b   :  { %482 = vsyncadd [#allocation6], 4294967264 }
  0x5c   :  { %483 = dma.done.wait [#allocation9], 1040  }
  0x5d   :  { %484 = vsyncadd [#allocation9], 4294966256  ;;  %v599_v0 = vld [vmem:[#allocation2] sm:$0xff]  ;;  %v601_v1 = vld [vmem:[#allocation2 + $0x8] sm:$0xff]  ;;  %v496_v11 = vmov 0.0   ;;  %vm497_vm0 = vmmov 0  }
  0x5e   :  { %86 = vadd.xlane.f32.xlu0 %v599_v0  ;;  %v331_v10 = vld [vmem:[#allocation8] sm:$0xff]   ;;  %299 = vmatprep.subr.bf16.mxu0 %v496_v11  ;;  %v332_v12 = vld [vmem:[#allocation8 + $0x8] sm:$0xff]   ;;  %v333_v13 = vld [vmem:[#allocation8 + $0x10] sm:$0xff]   ;;  %s498_s4 = smov [#allocation11]  }
  0x5f   :  { %300 = vmatpush3.bf16.msra.mxu0 %v331_v10  ;;  %v334_v14 = vld [vmem:[#allocation8 + $0x18] sm:$0xff]   ;;  %v335_v15 = vld [vmem:[#allocation8 + $0x20] sm:$0xff]   ;;  %315 = vmatprep.mubr.msk.bf16.mxu0 %vm497_vm0, %v496_v11  ;;  %v336_v16 = vld [vmem:[#allocation8 + $0x28] sm:$0xff]   ;;  %s265_s6 = sshll.u32 %s498_s4, 4  ;;  %s266_s6 = int_to_ptr.vmem [resolvable:$true] %s265_s6 }
  0x60   :  { %301 = vmatprep.subr.bf16.mxu0 %v496_v11  ;;  %v337_v17 = vld [vmem:[#allocation8 + $0x30] sm:$0xff]   ;;  %v338_v18 = vld [vmem:[#allocation8 + $0x38] sm:$0xff]   ;;  %v281_v46 = vld [vmem:[#allocation10] ss:$0 sm:$0xff]  ;;  %s457_s7 = scalar_lea.vmem %s266_s6, 256  ;;  %p462_p13 = scmp.lt.s32.totalorder %s266_s6, %s266_s6 }
  0x61   :  { %v279_v37 = vld [vmem:[#allocation5] ss:$0 sm:$0xff]  ;;  %v280_v41 = vld [vmem:[#allocation7] ss:$0 sm:$0xff]  ;;  %p458_p12 = scmp.ne.s32.totalorder %s266_s6, %s457_s7  ;;  %p463_p0 = scmp.lt.s32.totalorder %s457_s7, %s457_s7 }
  0x62   :  { %88 = vadd.xlane.f32.xlu0 %v601_v1 }
  0x63   :  { %302 = vmatpush3.bf16.msra.mxu0 %v332_v12  ;;  %p464_p1 = por %p463_p0, %p462_p13 }
  0x64   :  { %303 = vmatprep.subr.bf16.mxu0 %v496_v11 }
  0x65   :  { %p465_p2 = pnand %p464_p1, %p458_p12 }
  0x67   :  { %304 = vmatpush3.bf16.msra.mxu0 %v333_v13 }
  0x68   :  { %305 = vmatprep.subr.bf16.mxu0 %v496_v11 }
  0x6b   :  { %306 = vmatpush3.bf16.msra.mxu0 %v334_v14 }
  0x6c   :  { %307 = vmatprep.subr.bf16.mxu0 %v496_v11 }
  0x6f   :  { %308 = vmatpush3.bf16.msra.mxu0 %v335_v15 }
  0x70   :  { %309 = vmatprep.subr.bf16.mxu0 %v496_v11 }
  0x73   :  { %310 = vmatpush3.bf16.msra.mxu0 %v336_v16 }
  0x74   :  { %311 = vmatprep.subr.bf16.mxu0 %v496_v11 }
  0x77   :  { %312 = vmatpush3.bf16.msra.mxu0 %v337_v17 }
  0x78   :  { %313 = vmatprep.subr.bf16.mxu0 %v496_v11 }
  0x7b   :  { %314 = vmatpush3.bf16.msra.mxu0 %v338_v18 }
  0xeb   :  { %v87_v2 = vpop.xlane.xlu0 %86 }
  0xec   :  { %v91_v3 = vmul.f32 0.0078125, %v87_v2 }
  0xee   :  { %v93_v4 = vsub.f32 %v599_v0, %v91_v3 }
  0xef   :  { %v89_v5 = vpop.xlane.xlu0 %88 }
  0xf0   :  { %v92_v6 = vmul.f32 0.0078125, %v89_v5  ;;  %v95_v7 = vmul.f32 %v93_v4, %v93_v4 }
  0xf2   :  { %v94_v8 = vsub.f32 %v601_v1, %v92_v6  ;;  %97 = vadd.xlane.f32.xlu1 %v95_v7 }
  0xf4   :  { %v96_v9 = vmul.f32 %v94_v8, %v94_v8 }
  0xf6   :  { %99 = vadd.xlane.f32.xlu1 %v96_v9 }
 0x17f   :  { %v98_v19 = vpop.xlane.xlu1 %97 }
 0x180   :  { %v101_v20 = vmul.f32 0.007874016, %v98_v19 }
 0x182   :  { %339 = vrsqrt.f32 %v101_v20  ;;  %vm105_vm1 = vcmp.eq.f32.partialorder %v101_v20, inf  ;;  %v108_v25 = vand.u32 2147483648, %v101_v20  ;;  %vm107_vm2 = vcmp.eq.f32.partialorder %v101_v20, 0.0 }
 0x183   :  { %v100_v21 = vpop.xlane.xlu1 %99 }
 0x184   :  { %v102_v22 = vmul.f32 0.007874016, %v100_v21 }
 0x186   :  { %341 = vrsqrt.f32 %v102_v22  ;;  %vm112_vm3 = vcmp.eq.f32.partialorder %v102_v22, inf  ;;  %v115_v31 = vand.u32 2147483648, %v102_v22  ;;  %vm114_vm4 = vcmp.eq.f32.partialorder %v102_v22, 0.0 }
 0x18c   :  { %v340_v23 = vpop.eup %339 }
 0x18d   :  { %v104_v24 = vmul.f32 %v340_v23, %v101_v20 }
 0x18f   :  { %v106_v26 = vsel %vm105_vm1, %v101_v20, %v104_v24 }
 0x190   :  { %v342_v27 = vpop.eup %341  ;;  %v109_v28 = vsel %vm107_vm2, %v108_v25, %v106_v26 }
 0x191   :  { %v117_v29 = vadd.f32 1e-06, %v109_v28  ;;  %v111_v30 = vmul.f32 %v342_v27, %v102_v22 }
 0x193   :  { %v113_v32 = vsel %vm112_vm3, %v102_v22, %v111_v30  ;;  %343 = vrcp.f32 %v117_v29 }
 0x194   :  { %v116_v33 = vsel %vm114_vm4, %v115_v31, %v113_v32 }
 0x195   :  { %v118_v34 = vadd.f32 1e-06, %v116_v33 }
 0x197   :  { %345 = vrcp.f32 %v118_v34 }
 0x19d   :  { %v344_v35 = vpop.eup %343 }
 0x19e   :  { %v124_v36 = vmul.f32 %v344_v35, %v93_v4 }
 0x1a0   :  { %v132_v40 = vmul.f32 %v279_v37, %v124_v36 }
 0x1a1   :  { %v346_v38 = vpop.eup %345 }
 0x1a2   :  { %v125_v39 = vmul.f32 %v346_v38, %v94_v8  ;;  %v141_v43 = vadd.f32 %v280_v41, %v132_v40 }
 0x1a4   :  { %v133_v42 = vmul.f32 %v279_v37, %v125_v39 }
 0x1a6   :  { %v142_v44 = vadd.f32 %v280_v41, %v133_v42 }
 0x1a8   :  { %v143_v45 = vpack.c.bf16 %v142_v44, %v141_v43 }
 0x1aa   :  { %316 = vmatmul.mubr.bf16.vlgmr.msra.gmra.mrb[0].mxu0 %v143_v45 }
 0x27d   :  { %v249_v47 = vpop.f32.mrb[0].mxu0 }
 0x27e   :  { %v250_v48 = vadd.f32 %v281_v46, %v249_v47  ;;  %v317_v49 = vpop.f32.mrb[1].mxu0 }
 0x27f   :  { %v252_v50 = vpop.f32.mrb[2].mxu0 }
 0x280   :  { %v256_v51 = vadd.f32 %v250_v48, %v599_v0  ;;  %v253_v52 = vadd.f32 %v281_v46, %v252_v50  ;;  %v318_v53 = vpop.f32.mrb[3].mxu0 }
 0x282   :  { %258 = vst [vmem:[#allocation11] sm:$0xff] %v256_v51  ;;  %v257_v54 = vadd.f32 %v253_v52, %v601_v1 }
 0x284   :  { %259 = vst [vmem:[#allocation11 + $0x8] sm:$0xff] %v257_v54 }
 0x285   :  { %468 = shalt.err (!%p465_p2)
}
 0x286   :  { %s469_s10 = scalar_lea.hbm %s629_s5, 256 }
 0x287   :  { %p470_p3 = scmp.ne.s32.totalorder %s629_s5, %s469_s10  ;;  %p473_p4 = scmp.lt.u32.totalorder %s469_s10, %s629_s5 }
 0x289   :  { %p475_p5 = pnand %p473_p4, %p470_p3 }
 0x28b   :  { %478 = shalt.err (!%p475_p5)
}
 0x28c   :  { %271 = dma.vmem_to_hbm [thread:$0]  %s266_s6, 256, %s629_s5, [#allocation4], %s492_s3, %s492_s3, %s493_s21  }
 0x28d   :  { %485 = dma.done.wait [#allocation4], 256  }
 0x28e   :  { %486 = vsyncadd [#allocation4], 4294967040 }
 0x28f   :  { %275 = vsyncpa [#allocation3], 1 }
 0x290   :  { %276 = vsyncpa [#allocation6], 1 }
 0x291   :  { %277 = vsyncpa [#allocation9], 1 }
 0x292   :  { %278 = vsyncpa [#allocation4], 1 }

</bundles_post_ra>
